<compile_context>
chip_gen: v5e
topology: v5e:2x2
jax: 0.10.0
libtpu: 0.0.40
codegen_flags: <defaults>
</compile_context>

<pallas_src>
import jax
import jax.numpy as jnp
from jax.experimental import pallas as pl
from jax.experimental.pallas import tpu as pltpu

NUM_LAYERS = 6
RELU_LAYERS = (1, 3)  # ReLU after fc2 and fc4 in the original forward


def _round_up(n, m):
    return ((n + m - 1) // m) * m


# ----------------------------------------------------------------------------- kernel
def mlp_kernel(x0_ref, x1_ref, wa0_ref, wa1_ref, ba_ref,
               wb_ref, bb_ref, wc_ref, bc_ref, o_ref):
    # Fused layer A = fc2(fc1(x)), fan_in = 2: two f32 VPU multiply-adds.
    #   x0/x1: [tile_b, 1] (lane-broadcast), wa0/wa1/ba: [1, 64] (sublane-broadcast).
    h = x0_ref[...] * wa0_ref[...] + x1_ref[...] * wa1_ref[...] + ba_ref[...]
    h = jnp.maximum(h, 0.0)                                            # ReLU (after fc2)

    # Fused layer B = fc4(fc3(h)): 64x64 bf16 MXU matmul, f32 accumulate.
    h = jnp.dot(h.astype(jnp.bfloat16), wb_ref[...],
                preferred_element_type=jnp.float32) + bb_ref[...]
    h = jnp.maximum(h, 0.0)                                            # ReLU (after fc4)

    # Fused layer C = output_layer(fc5(h)): 64 x oc_pad bf16 MXU matmul.
    y = jnp.dot(h.astype(jnp.bfloat16), wc_ref[...],
                preferred_element_type=jnp.float32) + bc_ref[...]

    # Only the first out_dim lanes are real; compact masked store keeps HBM writeback small.
    o_ref[...] = y[:, :o_ref.shape[1]].astype(o_ref.dtype)


# ----------------------------------------------------------------------- param packing
def _f32_dot(a, b):
    return jnp.dot(a, b, precision=jax.lax.Precision.HIGHEST)


def fuse_params(params):
    """Compose the ReLU-free adjacent Linear pairs in f32 and pack kernel operands."""
    def compose(p0, p1):
        (w0, b0), (w1, b1) = p0, p1
        return _f32_dot(w0, w1), _f32_dot(b0, w1) + b1

    wA, bA = compose(params[0], params[1])     # [2, 64],  [1, 64]   (fc1 o fc2)
    wB, bB = compose(params[2], params[3])     # [64, 64], [1, 64]   (fc3 o fc4)
    wC, bC = compose(params[4], params[5])     # [64, out],[1, out]  (fc5 o output_layer)

    out_dim = wC.shape[1]
    oc_pad = _round_up(out_dim, 64)            # MXU-friendly N; HBM output stays out_dim wide
    wCp = jnp.zeros((wC.shape[0], oc_pad), jnp.float32).at[:, :out_dim].set(wC)
    bCp = jnp.zeros((1, oc_pad), jnp.float32).at[:, :out_dim].set(bC)

    return dict(
        wa0=wA[0:1, :], wa1=wA[1:2, :], ba=bA,            # f32 (VPU layer A)
        wb=wB.astype(jnp.bfloat16), bb=bB,                # bf16 MXU operand, f32 bias
        wc=wCp.astype(jnp.bfloat16), bc=bCp,
    )


# ---------------------------------------------------------------------------- wrapper
def net_forward(x, params, *, tile_b_max=2048):
    """x: [B, 2] f32. params: 6 tuples of (W [in,out], b [1,out]). Returns [B, out_put]."""
    B, in_dim = x.shape
    assert in_dim == 2, "Net takes 2 input features"
    out_dim = params[-1][0].shape[1]

    p = fuse_params(params)
    hid = p["wb"].shape[0]           # 64
    oc_pad = p["wc"].shape[1]

    # Batch tiling: sublane-aligned, large tiles, and >= 2 grid steps when possible so the
    # "parallel" batch axis can use both TensorCores on v7x (no-op on v5e/v6e).
    b_pad = _round_up(B, 8)
    tile_b = min(tile_b_max, b_pad)
    steps = pl.cdiv(b_pad, tile_b)
    if steps == 1 and b_pad >= 16:
        steps = 2
    tile_b = _round_up(pl.cdiv(b_pad, steps), 8)
    b_pad = tile_b * steps

    # Pad rows only; features keep their true widths (2 in / out_dim out).
    xp = x if b_pad == B else jnp.zeros((b_pad, in_dim), x.dtype).at[:B].set(x)
    x0, x1 = xp[:, 0:1], xp[:, 1:2]

    const2 = lambda i: (0, 0)
    out = pl.pallas_call(
        mlp_kernel,
        out_shape=jax.ShapeDtypeStruct((b_pad, out_dim), jnp.float32),
        grid=(steps,),
        in_specs=[
            pl.BlockSpec((tile_b, 1), lambda i: (i, 0)),    # x column 0 (batch-tiled)
            pl.BlockSpec((tile_b, 1), lambda i: (i, 0)),    # x column 1 (batch-tiled)
            pl.BlockSpec((1, hid), const2),                 # wA row 0   (VMEM-resident)
            pl.BlockSpec((1, hid), const2),                 # wA row 1
            pl.BlockSpec((1, hid), const2),                 # bA
            pl.BlockSpec((hid, hid), const2),               # wB (bf16)
            pl.BlockSpec((1, hid), const2),                 # bB
            pl.BlockSpec((hid, oc_pad), const2),            # wC (bf16)
            pl.BlockSpec((1, oc_pad), const2),              # bC
        ],
        out_specs=pl.BlockSpec((tile_b, out_dim), lambda i: (i, 0)),
        compiler_params=pltpu.CompilerParams(
            dimension_semantics=("parallel",),              # shard batch across TCs on v7x
            vmem_limit_bytes=32 * 1024 * 1024,
        ),
    )(x0, x1, p["wa0"], p["wa1"], p["ba"], p["wb"], p["bb"], p["wc"], p["bc"])

    return out[:B] if b_pad != B else out


# ------------------------------------------------------------------------- references
def init_params(key, out_put):
    """Deterministic init matching nn.Linear shapes (stored transposed: [in, out])."""
    dims = [2, 32, 64, 128, 64, 32, out_put]
    params = []
    for i in range(NUM_LAYERS):
        fan_in, fan_out = dims[i], dims[i + 1]
        key, kw, kb = jax.random.split(key, 3)
        bound = 1.0 / jnp.sqrt(fan_in)
        w = jax.random.uniform(kw, (fan_in, fan_out), jnp.float32, -bound, bound)
        b = jax.random.uniform(kb, (1, fan_out), jnp.float32, -bound, bound)
        params.append((w, b))
    return params


def reference_forward_f32(x, params):
    """Pure f32 reference, identical math to the PyTorch module's forward."""
    h = x
    for i, (w, b) in enumerate(params):
        h = _f32_dot(h, w) + b
        if i in RELU_LAYERS:
            h = jnp.maximum(h, 0.0)
    return h


def reference_forward_matched(x, params):
    """Reference that mirrors the kernel's fused / bf16-matmul math exactly."""
    p = fuse_params(params)
    out_dim = params[-1][0].shape[1]
    h = x[:, 0:1] * p["wa0"] + x[:, 1:2] * p["wa1"] + p["ba"]
    h = jnp.maximum(h, 0.0)
    h = jnp.dot(h.astype(jnp.bfloat16), p["wb"], preferred_element_type=jnp.float32) + p["bb"]
    h = jnp.maximum(h, 0.0)
    y = jnp.dot(h.astype(jnp.bfloat16), p["wc"], preferred_element_type=jnp.float32) + p["bc"]
    return y[:, :out_dim]


if __name__ == "__main__":
    key = jax.random.PRNGKey(0)
    k_params, k_x = jax.random.split(key)

    out_put = 4
    params = init_params(k_params, out_put)

    # Small primary test (single grid step).
    batch = 8
    x = jax.random.normal(k_x, (batch, 2), jnp.float32)
    y = jax.block_until_ready(net_forward(x, params))
    assert y.shape == (batch, out_put)
    assert jnp.allclose(y, reference_forward_matched(x, params), atol=1e-3, rtol=1e-3), \
        "mismatch vs fused/bf16-matched reference"
    assert jnp.allclose(y, reference_forward_f32(x, params), atol=1e-1, rtol=1e-1), \
        "mismatch vs f32 (PyTorch-equivalent) reference"

    # Secondary test exercising batch padding + a multi-step ("parallel") grid.
    batch2 = 50
    x2 = jax.random.normal(jax.random.fold_in(k_x, 1), (batch2, 2), jnp.float32)
    y2 = jax.block_until_ready(net_forward(x2, params))
    assert y2.shape == (batch2, out_put)
    assert jnp.allclose(y2, reference_forward_matched(x2, params), atol=1e-3, rtol=1e-3)
    assert jnp.allclose(y2, reference_forward_f32(x2, params), atol=1e-1, rtol=1e-1)

    print("KERNEL_OK")
</pallas_src>

<mosaic_0001>
module attributes {stable_mosaic.version = 11 : i64} {
  func.func @mlp_kernel(%arg0: i32, %arg1: memref<8x1xf32, #tpu.memory_space<vmem>>, %arg2: memref<8x1xf32, #tpu.memory_space<vmem>>, %arg3: memref<1x64xf32, #tpu.memory_space<vmem>>, %arg4: memref<1x64xf32, #tpu.memory_space<vmem>>, %arg5: memref<1x64xf32, #tpu.memory_space<vmem>>, %arg6: memref<64x64xbf16, #tpu.memory_space<vmem>>, %arg7: memref<1x64xf32, #tpu.memory_space<vmem>>, %arg8: memref<64x64xbf16, #tpu.memory_space<vmem>>, %arg9: memref<1x64xf32, #tpu.memory_space<vmem>>, %arg10: memref<8x4xf32, #tpu.memory_space<vmem>>) attributes {dimension_semantics = [#tpu.dimension_semantics<parallel>], iteration_bounds = array<i64: 1>, scalar_prefetch = 0 : i64, scratch_operands = 0 : i64, tpu.core_type = #tpu.core_type<tc>, window_params = [{transform_indices = @transform_0, window_bounds = array<i64: 8, 1>}, {transform_indices = @transform_1, window_bounds = array<i64: 8, 1>}, {pipeline_mode = #tpu.pipeline_mode<synchronous>, transform_indices = @transform_2, window_bounds = array<i64: 1, 64>}, {pipeline_mode = #tpu.pipeline_mode<synchronous>, transform_indices = @transform_3, window_bounds = array<i64: 1, 64>}, {pipeline_mode = #tpu.pipeline_mode<synchronous>, transform_indices = @transform_4, window_bounds = array<i64: 1, 64>}, {pipeline_mode = #tpu.pipeline_mode<synchronous>, transform_indices = @transform_5, window_bounds = array<i64: 64, 64>}, {pipeline_mode = #tpu.pipeline_mode<synchronous>, transform_indices = @transform_6, window_bounds = array<i64: 1, 64>}, {pipeline_mode = #tpu.pipeline_mode<synchronous>, transform_indices = @transform_7, window_bounds = array<i64: 64, 64>}, {pipeline_mode = #tpu.pipeline_mode<synchronous>, transform_indices = @transform_8, window_bounds = array<i64: 1, 64>}, {transform_indices = @transform_9, window_bounds = array<i64: 8, 4>}]} {
    %c0 = arith.constant 0 : index
    %c0_0 = arith.constant 0 : index
    %0 = vector.load %arg1[%c0, %c0_0] : memref<8x1xf32, #tpu.memory_space<vmem>>, vector<8x1xf32>
    %c0_1 = arith.constant 0 : index
    %c0_2 = arith.constant 0 : index
    %1 = vector.load %arg3[%c0_1, %c0_2] : memref<1x64xf32, #tpu.memory_space<vmem>>, vector<1x64xf32>
    %2 = vector.broadcast %0 : vector<8x1xf32> to vector<8x64xf32>
    %3 = vector.broadcast %1 : vector<1x64xf32> to vector<8x64xf32>
    %4 = arith.mulf %2, %3 : vector<8x64xf32>
    %c0_3 = arith.constant 0 : index
    %c0_4 = arith.constant 0 : index
    %5 = vector.load %arg2[%c0_3, %c0_4] : memref<8x1xf32, #tpu.memory_space<vmem>>, vector<8x1xf32>
    %c0_5 = arith.constant 0 : index
    %c0_6 = arith.constant 0 : index
    %6 = vector.load %arg4[%c0_5, %c0_6] : memref<1x64xf32, #tpu.memory_space<vmem>>, vector<1x64xf32>
    %7 = vector.broadcast %5 : vector<8x1xf32> to vector<8x64xf32>
    %8 = vector.broadcast %6 : vector<1x64xf32> to vector<8x64xf32>
    %9 = arith.mulf %7, %8 : vector<8x64xf32>
    %10 = arith.addf %4, %9 : vector<8x64xf32>
    %c0_7 = arith.constant 0 : index
    %c0_8 = arith.constant 0 : index
    %11 = vector.load %arg5[%c0_7, %c0_8] : memref<1x64xf32, #tpu.memory_space<vmem>>, vector<1x64xf32>
    %12 = vector.broadcast %11 : vector<1x64xf32> to vector<8x64xf32>
    %13 = arith.addf %10, %12 : vector<8x64xf32>
    %cst = arith.constant 0.000000e+00 : f32
    %14 = vector.broadcast %cst : f32 to vector<8x64xf32>
    %15 = arith.maximumf %13, %14 : vector<8x64xf32>
    %16 = arith.truncf %15 : vector<8x64xf32> to vector<8x64xbf16>
    %c0_9 = arith.constant 0 : index
    %c0_10 = arith.constant 0 : index
    %17 = vector.load %arg6[%c0_9, %c0_10] : memref<64x64xbf16, #tpu.memory_space<vmem>>, vector<64x64xbf16>
    %cst_11 = arith.constant dense<0.000000e+00> : vector<8x64xf32>
    %18 = tpu.matmul %16, %17, %cst_11 {dimension_numbers = #tpu.dot_dimension_numbers<[1], [0], [0], [1], [0, 0, 1, 1], [], []>} : vector<8x64xbf16>, vector<64x64xbf16>, vector<8x64xf32> -> vector<8x64xf32>
    %c0_12 = arith.constant 0 : index
    %c0_13 = arith.constant 0 : index
    %19 = vector.load %arg7[%c0_12, %c0_13] : memref<1x64xf32, #tpu.memory_space<vmem>>, vector<1x64xf32>
    %20 = vector.broadcast %19 : vector<1x64xf32> to vector<8x64xf32>
    %21 = arith.addf %18, %20 : vector<8x64xf32>
    %cst_14 = arith.constant 0.000000e+00 : f32
    %22 = vector.broadcast %cst_14 : f32 to vector<8x64xf32>
    %23 = arith.maximumf %21, %22 : vector<8x64xf32>
    %24 = arith.truncf %23 : vector<8x64xf32> to vector<8x64xbf16>
    %c0_15 = arith.constant 0 : index
    %c0_16 = arith.constant 0 : index
    %25 = vector.load %arg8[%c0_15, %c0_16] : memref<64x64xbf16, #tpu.memory_space<vmem>>, vector<64x64xbf16>
    %cst_17 = arith.constant dense<0.000000e+00> : vector<8x64xf32>
    %26 = tpu.matmul %24, %25, %cst_17 {dimension_numbers = #tpu.dot_dimension_numbers<[1], [0], [0], [1], [0, 0, 1, 1], [], []>} : vector<8x64xbf16>, vector<64x64xbf16>, vector<8x64xf32> -> vector<8x64xf32>
    %c0_18 = arith.constant 0 : index
    %c0_19 = arith.constant 0 : index
    %27 = vector.load %arg9[%c0_18, %c0_19] : memref<1x64xf32, #tpu.memory_space<vmem>>, vector<1x64xf32>
    %28 = vector.broadcast %27 : vector<1x64xf32> to vector<8x64xf32>
    %29 = arith.addf %26, %28 : vector<8x64xf32>
    %30 = vector.extract_strided_slice %29 {offsets = [0, 0], sizes = [8, 4], strides = [1, 1]} : vector<8x64xf32> to vector<8x4xf32>
    %c0_20 = arith.constant 0 : index
    %c0_21 = arith.constant 0 : index
    %31 = vector.load %arg10[%c0_20, %c0_21] : memref<8x4xf32, #tpu.memory_space<vmem>>, vector<8x4xf32>
    tpu.vector_store %arg10[%c0_20, %c0_21], %30 {strides = array<i32>} : memref<8x4xf32, #tpu.memory_space<vmem>>, vector<8x4xf32>,
    return
  }
  func.func @transform_0(%arg0: i32) -> (i32, i32) {
    %c0_i32 = arith.constant 0 : i32
    %c0_i32_0 = arith.constant 0 : i32
    return %arg0, %c0_i32 : i32, i32
  }
  func.func @transform_1(%arg0: i32) -> (i32, i32) {
    %c0_i32 = arith.constant 0 : i32
    %c0_i32_0 = arith.constant 0 : i32
    return %arg0, %c0_i32 : i32, i32
  }
  func.func @transform_2(%arg0: i32) -> (i32, i32) {
    %c0_i32 = arith.constant 0 : i32
    %c0_i32_0 = arith.constant 0 : i32
    %c0_i32_1 = arith.constant 0 : i32
    return %c0_i32, %c0_i32_0 : i32, i32
  }
  func.func @transform_3(%arg0: i32) -> (i32, i32) {
    %c0_i32 = arith.constant 0 : i32
    %c0_i32_0 = arith.constant 0 : i32
    %c0_i32_1 = arith.constant 0 : i32
    return %c0_i32, %c0_i32_0 : i32, i32
  }
  func.func @transform_4(%arg0: i32) -> (i32, i32) {
    %c0_i32 = arith.constant 0 : i32
    %c0_i32_0 = arith.constant 0 : i32
    %c0_i32_1 = arith.constant 0 : i32
    return %c0_i32, %c0_i32_0 : i32, i32
  }
  func.func @transform_5(%arg0: i32) -> (i32, i32) {
    %c0_i32 = arith.constant 0 : i32
    %c0_i32_0 = arith.constant 0 : i32
    %c0_i32_1 = arith.constant 0 : i32
    return %c0_i32, %c0_i32_0 : i32, i32
  }
  func.func @transform_6(%arg0: i32) -> (i32, i32) {
    %c0_i32 = arith.constant 0 : i32
    %c0_i32_0 = arith.constant 0 : i32
    %c0_i32_1 = arith.constant 0 : i32
    return %c0_i32, %c0_i32_0 : i32, i32
  }
  func.func @transform_7(%arg0: i32) -> (i32, i32) {
    %c0_i32 = arith.constant 0 : i32
    %c0_i32_0 = arith.constant 0 : i32
    %c0_i32_1 = arith.constant 0 : i32
    return %c0_i32, %c0_i32_0 : i32, i32
  }
  func.func @transform_8(%arg0: i32) -> (i32, i32) {
    %c0_i32 = arith.constant 0 : i32
    %c0_i32_0 = arith.constant 0 : i32
    %c0_i32_1 = arith.constant 0 : i32
    return %c0_i32, %c0_i32_0 : i32, i32
  }
  func.func @transform_9(%arg0: i32) -> (i32, i32) {
    %c0_i32 = arith.constant 0 : i32
    %c0_i32_0 = arith.constant 0 : i32
    return %arg0, %c0_i32 : i32, i32
  }
}

</mosaic_0001>

<bundles_post_ra>
// kernel: tpu_custom_call.1
= control target key start
LH: loop header
LB: loop body
LE: loop exit
PB: predicated region body
PF: predicated region fallthrough
CT: control target
= control target key end

     0   :  { %14 = vsyncpa [#allocation3], 0  ;;  %s400_s0 = inlined_call_operand.vmem [shape: f32[8,1], index: 0, kind: input, shape index: {}]   ;;  %s401_s1 = inlined_call_operand.vmem [shape: f32[8,1], index: 1, kind: input, shape index: {}]   ;;  %s402_s2 = inlined_call_operand.vmem [shape: f32[1,64], index: 2, kind: input, shape index: {}]   ;;  %s403_s3 = inlined_call_operand.vmem [shape: f32[1,64], index: 3, kind: input, shape index: {}]   ;;  %s404_s4 = inlined_call_operand.vmem [shape: f32[1,64], index: 4, kind: input, shape index: {}]   ;;  %s405_s5 = inlined_call_operand.hbm [shape: bf16[64,64], index: 5, kind: input, shape index: {}]   ;;  %s406_s6 = inlined_call_operand.vmem [shape: f32[1,64], index: 6, kind: input, shape index: {}]   ;;  %s407_s7 = inlined_call_operand.hbm [shape: bf16[64,64], index: 7, kind: input, shape index: {}]   ;;  %s408_s8 = inlined_call_operand.vmem [shape: f32[1,64], index: 8, kind: input, shape index: {}]   ;;  %s409_s9 = inlined_call_operand.vmem [shape: f32[8,4], index: 9, kind: output, shape index: {}]  }
   0x1   :  { %s30_s11 = sshll.u32 %s405_s5, 4  ;;  %s31_s11 = int_to_ptr.hbm [resolvable:$true] %s30_s11 }
   0x2   :  { %15 = vsyncpa [#allocation5], 0  ;;  %s315_s12 = smov [#allocation2]   ;;  %s45_s16 = sshll.u32 %s407_s7, 4  ;;  %s46_s16 = int_to_ptr.hbm [resolvable:$true] %s45_s16 }
   0x3   :  { %s32_s13 = sshll.u32 %s315_s12, 4  ;;  %s316_s17 = smov 64   ;;  %s33_s13 = int_to_ptr.vmem [resolvable:$true] %s32_s13 }
   0x4   :  { %s317_s18 = smov 4   ;;  %s318_s19 = smov [#allocation4]  }
   0x5   :  { %38 = dma.hbm_to_vmem [thread:$0]  %s31_s11, 512, %s33_s13, [#allocation3], %s316_s17, %s316_s17, %s317_s18  }
   0x6   :  { %s47_s20 = sshll.u32 %s318_s19, 4  ;;  %s48_s20 = int_to_ptr.vmem [resolvable:$true] %s47_s20 }
   0x7   :  { %53 = dma.hbm_to_vmem [thread:$0]  %s46_s16, 512, %s48_s20, [#allocation5], %s316_s17, %s316_s17, %s317_s18  }
   0x8   :  { %311 = dma.done.wait [#allocation3], 512  }
   0x9   :  { %312 = vsyncadd [#allocation3], 4294966784 }
   0xa   :  { %313 = dma.done.wait [#allocation5], 512  }
   0xb   :  { %314 = vsyncadd [#allocation5], 4294966784  ;;  %v319_v0 = vmov 0   ;;  %v65_v1 = vld [vmem:[%s400_s0] sm:$0xff]  ;;  %v247_v3 = vld [vmem:[#allocation2 + $0x18] sm:$0xff]  ;;  %vm131_vm0 = vcmask 523264  }
   0xc   :  { %257 = vset.pattern.permute.xlu0 %v319_v0  ;;  %v76_v2 = vld [vmem:[%s401_s1] sm:$0xff]  ;;  %139 = vmatpush.bf16.msra.mxu0 %v247_v3  ;;  %v246_v4 = vld [vmem:[#allocation2 + $0x10] sm:$0xff]  ;;  %v245_v5 = vld [vmem:[#allocation2 + $0x8] sm:$0xff]  ;;  %vm202_vm1 = vcmask 31744  }
   0xd   :  { %69 = vperm.xlu0 %257, %v65_v1   ;;  %v244_v6 = vld [vmem:[#allocation2] sm:$0xff]  ;;  %v251_v7 = vld [vmem:[#allocation4 + $0x18] sm:$0xff]  ;;  %v250_v8 = vld [vmem:[#allocation4 + $0x10] sm:$0xff] }
   0xe   :  { %193 = vmatpush.bf16.msra.mxu1 %v251_v7  ;;  %v258_v10 = vld [vmem:[%s402_s2] ss:$0 sm:$0xff]  ;;  %v249_v20 = vld [vmem:[#allocation4 + $0x8] sm:$0xff] }
   0xf   :  { %v259_v11 = vld [vmem:[%s403_s3] ss:$0 sm:$0xff] }
  0x10   :  { %140 = vmatpush.bf16.msra.mxu0 %v246_v4  ;;  %v260_v14 = vld [vmem:[%s404_s4] ss:$0 sm:$0xff] }
  0x11   :  { %v248_v21 = vld [vmem:[#allocation4] sm:$0xff] }
  0x12   :  { %194 = vmatpush.bf16.msra.mxu1 %v250_v8  ;;  %v261_v22 = vld [vmem:[%s406_s6] ss:$0 sm:$0xff] }
  0x13   :  { %v262_v28 = vld [vmem:[%s408_s8] ss:$0 sm:$0xff] }
  0x14   :  { %141 = vmatpush.bf16.msra.mxu0 %v245_v5 }
  0x15   :  { %80 = vperm.xlu0 %257, %v76_v2  }
  0x16   :  { %195 = vmatpush.bf16.msra.mxu1 %v249_v20 }
  0x18   :  { %142 = vmatpush.bf16.msra.mxu0 %v244_v6 }
  0x1a   :  { %196 = vmatpush.bf16.msra.mxu1 %v248_v21 }
  0x7f   :  { %v70_v9 = vpop.permute.xlu0 %69 }
  0x80   :  { %v75_v13 = vmul.f32 %v258_v10, %v70_v9 }
  0x87   :  { %v81_v12 = vpop.permute.xlu0 %80 }
  0x88   :  { %v86_v15 = vmul.f32 %v259_v11, %v81_v12 }
  0x8a   :  { %v87_v16 = vadd.f32 %v86_v15, %v75_v13 }
  0x8c   :  { %v92_v17 = vadd.f32 %v260_v14, %v87_v16 }
  0x8e   :  { %v93_v18 = vmax.f32 %v92_v17, 0.0 }
  0x90   :  { %v94_v19 = vpack.c.bf16 %v93_v18, %v93_v18 }
  0x92   :  { %226 = vmatmul.msk.bf16.vlgmr.msra.gmra.mxu0 %vm131_vm0, %v94_v19 }
 0x10f   :  { %v144_v23 = vpop.f32.mrf.mxu0 }
 0x110   :  { %v145_v24 = vadd.f32 %v261_v22, %v144_v23 }
 0x112   :  { %v148_v25 = vmax.f32 %v145_v24, 0.0 }
 0x114   :  { %v149_v26 = vpack.c.bf16 %v148_v25, %v148_v25 }
 0x116   :  { %243 = vmatmul.msk.bf16.vlgmr.msra.gmra.mxu1 %vm131_vm0, %v149_v26 }
 0x117   :  { %v146_v27 = vpop.f32.mrf.mxu0 }
 0x193   :  { %v198_v29 = vpop.f32.mrf.mxu1 }
 0x194   :  { %v199_v30 = vadd.f32 %v262_v28, %v198_v29 }
 0x196   :  { %203 = vst.msk [vmem:[%s409_s9] sm:$0xff] %vm202_vm1, %v199_v30 }
 0x19b   :  { %v200_v31 = vpop.f32.mrf.mxu1 }
 0x19c   :  { %208 = vsyncpa [#allocation3], 1 }
 0x19d   :  { %209 = vsyncpa [#allocation5], 1 }

</bundles_post_ra>
